<compile_context>
chip_gen: v7x
topology: tpu7x:2x2x1
jax: 0.10.0
libtpu: 0.0.40
codegen_flags: <defaults>
</compile_context>

<pallas_src>
import jax
import jax.numpy as jnp
from jax.experimental import pallas as pl
from jax.experimental.pallas import tpu as pltpu


def _round_up(x, m):
    return ((x + m - 1) // m) * m


def _distance_kernel(x1, x2, x3, x4,
                     w1, w2, w3, w4,
                     b1, b2, b3, b4,
                     wf_ref, bc_ref, out_ref):
    H = w1.shape[1]

    def branch(x_ref, w_ref, b_ref, row0):
        # relu(x_i @ W_i + b_i) with f32 accumulate / f32 epilogue.
        h = jnp.maximum(
            jnp.dot(x_ref[...], w_ref[...], preferred_element_type=jnp.float32)
            + b_ref[...],
            0.0,
        )                                               # (TB, H) f32
        wf_rows = wf_ref[row0:row0 + H, :]              # static, sublane-aligned view
        return jnp.dot(h.astype(wf_rows.dtype), wf_rows,
                       preferred_element_type=jnp.float32)   # (TB, E) f32

    # d = (h @ Wf + bf) - centroid, with (bf - centroid) pre-folded into bc.
    d = bc_ref[...]                                     # (1, E) f32
    d = d + branch(x1, w1, b1, 0 * H)
    d = d + branch(x2, w2, b2, 1 * H)
    d = d + branch(x3, w3, b3, 2 * H)
    d = d + branch(x4, w4, b4, 3 * H)

    # Batch L1 distance to the centroid (reduce over the feature/lane axis).
    out_ref[...] = jnp.sum(jnp.abs(d), axis=1, keepdims=True)   # (TB, 1)


def pack_params(omics_params, fusion, centroid):
    """Prepare kernel operands ONCE at parameter-build time.

    Matmul weights are stored in bf16 (MXU operands); biases / folded centroid
    stay f32 (VPU epilogue)."""
    ws = [w.astype(jnp.bfloat16) for (w, _) in omics_params]
    bs = [b.reshape(1, -1).astype(jnp.float32) for (_, b) in omics_params]
    wf, bf = fusion
    bc = (bf.reshape(1, -1) - centroid.reshape(1, -1)).astype(jnp.float32)
    return {"ws": ws, "bs": bs, "wf": wf.astype(jnp.bfloat16), "bc": bc}


def model_with_distance_output(inputs, packed, *, tile_b=2048):
    """inputs: list of 4 arrays (B, D_i); packed: output of pack_params.
    Returns the (B,) L1 distances."""
    # Stream activations in bf16 (do not upcast to f32): halves HBM traffic
    # on the dominant (activation) stream; accumulation is f32 on the MXU.
    xs = [a.astype(jnp.bfloat16) for a in inputs]
    B = xs[0].shape[0]
    dims = [x.shape[1] for x in xs]

    ws, bs, wf, bc = packed["ws"], packed["bs"], packed["wf"], packed["bc"]
    H = ws[0].shape[1]
    H4, E = wf.shape

    # Batch tiling:
    #  * tiles capped at `tile_b` rows (amortizes per-grid-step overhead),
    #  * >=2 grid steps once B is large enough to matter (v7x dual-TC),
    #  * tile derived from B so padding stays < 8 rows per tile.
    b8 = _round_up(B, 8)
    n_tiles = max(1, -(-b8 // tile_b))
    if n_tiles == 1 and b8 >= 512:
        n_tiles = 2                      # give v7x's second TC work; no-op cost elsewhere
    tb = _round_up(-(-b8 // n_tiles), 8)
    b_pad = tb * n_tiles
    if b_pad != B:
        xs = [jnp.pad(x, ((0, b_pad - B), (0, 0))) for x in xs]

    in_specs = (
        # activations: gridded over batch
        [pl.BlockSpec((tb, d), lambda i: (i, 0)) for d in dims]
        # encoder weights / biases: VMEM-resident (constant index_map)
        + [pl.BlockSpec((d, H), lambda i: (0, 0)) for d in dims]
        + [pl.BlockSpec((1, H), lambda i: (0, 0)) for _ in dims]
        # fusion weight (sliced per omics inside the kernel) + folded bias-centroid
        + [pl.BlockSpec((H4, E), lambda i: (0, 0)),
           pl.BlockSpec((1, E), lambda i: (0, 0))]
    )

    out = pl.pallas_call(
        _distance_kernel,
        out_shape=jax.ShapeDtypeStruct((b_pad, 1), jnp.float32),
        grid=(n_tiles,),
        in_specs=in_specs,
        out_specs=pl.BlockSpec((tb, 1), lambda i: (i, 0)),
        compiler_params=pltpu.CompilerParams(
            dimension_semantics=("parallel",),        # shards batch on v7x's 2 TCs
            vmem_limit_bytes=32 * 1024 * 1024,
        ),
    )(*xs, *ws, *bs, wf, bc)

    return out[:B, 0]   # (B,) -- matches torch.sum(..., dim=1)


def _reference(inputs, omics_params, fusion, centroid):
    """Pure-JAX f32 reference (original unpacked formulation)."""
    hs = []
    for x, (w, b) in zip(inputs, omics_params):
        hs.append(jnp.maximum(x @ w + b, 0.0))
    h = jnp.concatenate(hs, axis=-1)
    wf, bf = fusion
    emb = h @ wf + bf
    return jnp.sum(jnp.abs(emb - centroid), axis=1)


if __name__ == "__main__":
    key = jax.random.PRNGKey(0)

    dims = [32, 24, 16, 40]    # per-omics input dims (gex, methy, mut, cna)
    H = 32                     # per-omics hidden dim
    E = 32                     # fused embedding dim

    keys = jax.random.split(key, 24)

    omics_params = []
    for i in range(4):
        w = jax.random.normal(keys[4 + i], (dims[i], H), dtype=jnp.float32) * 0.1
        b = jax.random.normal(keys[8 + i], (1, H), dtype=jnp.float32) * 0.1
        omics_params.append((w, b))
    wf = jax.random.normal(keys[12], (4 * H, E), dtype=jnp.float32) * 0.1
    bf = jax.random.normal(keys[13], (1, E), dtype=jnp.float32) * 0.1
    centroid = jax.random.normal(keys[14], (1, E), dtype=jnp.float32)

    packed = pack_params(omics_params, (wf, bf), centroid)

    # --- case 1: aligned small batch (single tile, no padding) ---
    B1 = 8
    inputs1 = [jax.random.normal(keys[i], (B1, dims[i]), dtype=jnp.float32)
               for i in range(4)]
    dist1 = jax.block_until_ready(model_with_distance_output(inputs1, packed))
    ref1 = _reference(inputs1, omics_params, (wf, bf), centroid)
    assert dist1.shape == (B1,)
    assert jnp.allclose(dist1, ref1, rtol=2e-2, atol=2e-1), (dist1, ref1)

    # --- case 2: unaligned batch (exercises the <8-row tail padding path) ---
    B2 = 20
    inputs2 = [jax.random.normal(keys[16 + i], (B2, dims[i]), dtype=jnp.float32)
               for i in range(4)]
    dist2 = jax.block_until_ready(model_with_distance_output(inputs2, packed))
    ref2 = _reference(inputs2, omics_params, (wf, bf), centroid)
    assert dist2.shape == (B2,)
    assert jnp.allclose(dist2, ref2, rtol=2e-2, atol=2e-1), (dist2, ref2)

    print("KERNEL_OK")
</pallas_src>

<mosaic_0001>
module attributes {stable_mosaic.version = 11 : i64} {
  func.func @_distance_kernel(%arg0: i32, %arg1: memref<8x32xbf16, #tpu.memory_space<vmem>>, %arg2: memref<8x24xbf16, #tpu.memory_space<vmem>>, %arg3: memref<8x16xbf16, #tpu.memory_space<vmem>>, %arg4: memref<8x40xbf16, #tpu.memory_space<vmem>>, %arg5: memref<32x32xbf16, #tpu.memory_space<vmem>>, %arg6: memref<24x32xbf16, #tpu.memory_space<vmem>>, %arg7: memref<16x32xbf16, #tpu.memory_space<vmem>>, %arg8: memref<40x32xbf16, #tpu.memory_space<vmem>>, %arg9: memref<1x32xf32, #tpu.memory_space<vmem>>, %arg10: memref<1x32xf32, #tpu.memory_space<vmem>>, %arg11: memref<1x32xf32, #tpu.memory_space<vmem>>, %arg12: memref<1x32xf32, #tpu.memory_space<vmem>>, %arg13: memref<128x32xbf16, #tpu.memory_space<vmem>>, %arg14: memref<1x32xf32, #tpu.memory_space<vmem>>, %arg15: memref<8x1xf32, #tpu.memory_space<vmem>>) attributes {dimension_semantics = [#tpu.dimension_semantics<parallel>], iteration_bounds = array<i64: 1>, scalar_prefetch = 0 : i64, scratch_operands = 0 : i64, tpu.core_type = #tpu.core_type<tc>, window_params = [{transform_indices = @transform_0, window_bounds = array<i64: 8, 32>}, {transform_indices = @transform_1, window_bounds = array<i64: 8, 24>}, {transform_indices = @transform_2, window_bounds = array<i64: 8, 16>}, {transform_indices = @transform_3, window_bounds = array<i64: 8, 40>}, {pipeline_mode = #tpu.pipeline_mode<synchronous>, transform_indices = @transform_4, window_bounds = array<i64: 32, 32>}, {pipeline_mode = #tpu.pipeline_mode<synchronous>, transform_indices = @transform_5, window_bounds = array<i64: 24, 32>}, {pipeline_mode = #tpu.pipeline_mode<synchronous>, transform_indices = @transform_6, window_bounds = array<i64: 16, 32>}, {pipeline_mode = #tpu.pipeline_mode<synchronous>, transform_indices = @transform_7, window_bounds = array<i64: 40, 32>}, {pipeline_mode = #tpu.pipeline_mode<synchronous>, transform_indices = @transform_8, window_bounds = array<i64: 1, 32>}, {pipeline_mode = #tpu.pipeline_mode<synchronous>, transform_indices = @transform_9, window_bounds = array<i64: 1, 32>}, {pipeline_mode = #tpu.pipeline_mode<synchronous>, transform_indices = @transform_10, window_bounds = array<i64: 1, 32>}, {pipeline_mode = #tpu.pipeline_mode<synchronous>, transform_indices = @transform_11, window_bounds = array<i64: 1, 32>}, {pipeline_mode = #tpu.pipeline_mode<synchronous>, transform_indices = @transform_12, window_bounds = array<i64: 128, 32>}, {pipeline_mode = #tpu.pipeline_mode<synchronous>, transform_indices = @transform_13, window_bounds = array<i64: 1, 32>}, {transform_indices = @transform_14, window_bounds = array<i64: 8, 1>}]} {
    %c0 = arith.constant 0 : index
    %c0_0 = arith.constant 0 : index
    %0 = vector.load %arg14[%c0, %c0_0] : memref<1x32xf32, #tpu.memory_space<vmem>>, vector<1x32xf32>
    %c0_1 = arith.constant 0 : index
    %c0_2 = arith.constant 0 : index
    %1 = vector.load %arg1[%c0_1, %c0_2] : memref<8x32xbf16, #tpu.memory_space<vmem>>, vector<8x32xbf16>
    %c0_3 = arith.constant 0 : index
    %c0_4 = arith.constant 0 : index
    %2 = vector.load %arg5[%c0_3, %c0_4] : memref<32x32xbf16, #tpu.memory_space<vmem>>, vector<32x32xbf16>
    %cst = arith.constant dense<0.000000e+00> : vector<8x32xf32>
    %3 = tpu.matmul %1, %2, %cst {dimension_numbers = #tpu.dot_dimension_numbers<[1], [0], [0], [1], [0, 0, 1, 1], [], []>} : vector<8x32xbf16>, vector<32x32xbf16>, vector<8x32xf32> -> vector<8x32xf32>
    %c0_5 = arith.constant 0 : index
    %c0_6 = arith.constant 0 : index
    %4 = vector.load %arg9[%c0_5, %c0_6] : memref<1x32xf32, #tpu.memory_space<vmem>>, vector<1x32xf32>
    %5 = vector.broadcast %4 : vector<1x32xf32> to vector<8x32xf32>
    %6 = arith.addf %3, %5 : vector<8x32xf32>
    %cst_7 = arith.constant 0.000000e+00 : f32
    %7 = vector.broadcast %cst_7 : f32 to vector<8x32xf32>
    %8 = arith.maximumf %6, %7 : vector<8x32xf32>
    %c0_8 = arith.constant 0 : index
    %c0_9 = arith.constant 0 : index
    %9 = vector.load %arg13[%c0_8, %c0_9] : memref<128x32xbf16, #tpu.memory_space<vmem>>, vector<32x32xbf16>
    %10 = arith.truncf %8 : vector<8x32xf32> to vector<8x32xbf16>
    %cst_10 = arith.constant dense<0.000000e+00> : vector<8x32xf32>
    %11 = tpu.matmul %10, %9, %cst_10 {dimension_numbers = #tpu.dot_dimension_numbers<[1], [0], [0], [1], [0, 0, 1, 1], [], []>} : vector<8x32xbf16>, vector<32x32xbf16>, vector<8x32xf32> -> vector<8x32xf32>
    %12 = vector.broadcast %0 : vector<1x32xf32> to vector<8x32xf32>
    %13 = arith.addf %12, %11 : vector<8x32xf32>
    %c0_11 = arith.constant 0 : index
    %c0_12 = arith.constant 0 : index
    %14 = vector.load %arg2[%c0_11, %c0_12] : memref<8x24xbf16, #tpu.memory_space<vmem>>, vector<8x24xbf16>
    %c0_13 = arith.constant 0 : index
    %c0_14 = arith.constant 0 : index
    %15 = vector.load %arg6[%c0_13, %c0_14] : memref<24x32xbf16, #tpu.memory_space<vmem>>, vector<24x32xbf16>
    %cst_15 = arith.constant dense<0.000000e+00> : vector<8x32xf32>
    %16 = tpu.matmul %14, %15, %cst_15 {dimension_numbers = #tpu.dot_dimension_numbers<[1], [0], [0], [1], [0, 0, 1, 1], [], []>} : vector<8x24xbf16>, vector<24x32xbf16>, vector<8x32xf32> -> vector<8x32xf32>
    %c0_16 = arith.constant 0 : index
    %c0_17 = arith.constant 0 : index
    %17 = vector.load %arg10[%c0_16, %c0_17] : memref<1x32xf32, #tpu.memory_space<vmem>>, vector<1x32xf32>
    %18 = vector.broadcast %17 : vector<1x32xf32> to vector<8x32xf32>
    %19 = arith.addf %16, %18 : vector<8x32xf32>
    %cst_18 = arith.constant 0.000000e+00 : f32
    %20 = vector.broadcast %cst_18 : f32 to vector<8x32xf32>
    %21 = arith.maximumf %19, %20 : vector<8x32xf32>
    %c32 = arith.constant 32 : index
    %c0_19 = arith.constant 0 : index
    %22 = vector.load %arg13[%c32, %c0_19] : memref<128x32xbf16, #tpu.memory_space<vmem>>, vector<32x32xbf16>
    %23 = arith.truncf %21 : vector<8x32xf32> to vector<8x32xbf16>
    %cst_20 = arith.constant dense<0.000000e+00> : vector<8x32xf32>
    %24 = tpu.matmul %23, %22, %cst_20 {dimension_numbers = #tpu.dot_dimension_numbers<[1], [0], [0], [1], [0, 0, 1, 1], [], []>} : vector<8x32xbf16>, vector<32x32xbf16>, vector<8x32xf32> -> vector<8x32xf32>
    %25 = arith.addf %13, %24 : vector<8x32xf32>
    %c0_21 = arith.constant 0 : index
    %c0_22 = arith.constant 0 : index
    %26 = vector.load %arg3[%c0_21, %c0_22] : memref<8x16xbf16, #tpu.memory_space<vmem>>, vector<8x16xbf16>
    %c0_23 = arith.constant 0 : index
    %c0_24 = arith.constant 0 : index
    %27 = vector.load %arg7[%c0_23, %c0_24] : memref<16x32xbf16, #tpu.memory_space<vmem>>, vector<16x32xbf16>
    %cst_25 = arith.constant dense<0.000000e+00> : vector<8x32xf32>
    %28 = tpu.matmul %26, %27, %cst_25 {dimension_numbers = #tpu.dot_dimension_numbers<[1], [0], [0], [1], [0, 0, 1, 1], [], []>} : vector<8x16xbf16>, vector<16x32xbf16>, vector<8x32xf32> -> vector<8x32xf32>
    %c0_26 = arith.constant 0 : index
    %c0_27 = arith.constant 0 : index
    %29 = vector.load %arg11[%c0_26, %c0_27] : memref<1x32xf32, #tpu.memory_space<vmem>>, vector<1x32xf32>
    %30 = vector.broadcast %29 : vector<1x32xf32> to vector<8x32xf32>
    %31 = arith.addf %28, %30 : vector<8x32xf32>
    %cst_28 = arith.constant 0.000000e+00 : f32
    %32 = vector.broadcast %cst_28 : f32 to vector<8x32xf32>
    %33 = arith.maximumf %31, %32 : vector<8x32xf32>
    %c64 = arith.constant 64 : index
    %c0_29 = arith.constant 0 : index
    %34 = vector.load %arg13[%c64, %c0_29] : memref<128x32xbf16, #tpu.memory_space<vmem>>, vector<32x32xbf16>
    %35 = arith.truncf %33 : vector<8x32xf32> to vector<8x32xbf16>
    %cst_30 = arith.constant dense<0.000000e+00> : vector<8x32xf32>
    %36 = tpu.matmul %35, %34, %cst_30 {dimension_numbers = #tpu.dot_dimension_numbers<[1], [0], [0], [1], [0, 0, 1, 1], [], []>} : vector<8x32xbf16>, vector<32x32xbf16>, vector<8x32xf32> -> vector<8x32xf32>
    %37 = arith.addf %25, %36 : vector<8x32xf32>
    %c0_31 = arith.constant 0 : index
    %c0_32 = arith.constant 0 : index
    %38 = vector.load %arg4[%c0_31, %c0_32] : memref<8x40xbf16, #tpu.memory_space<vmem>>, vector<8x40xbf16>
    %c0_33 = arith.constant 0 : index
    %c0_34 = arith.constant 0 : index
    %39 = vector.load %arg8[%c0_33, %c0_34] : memref<40x32xbf16, #tpu.memory_space<vmem>>, vector<40x32xbf16>
    %cst_35 = arith.constant dense<0.000000e+00> : vector<8x32xf32>
    %40 = tpu.matmul %38, %39, %cst_35 {dimension_numbers = #tpu.dot_dimension_numbers<[1], [0], [0], [1], [0, 0, 1, 1], [], []>} : vector<8x40xbf16>, vector<40x32xbf16>, vector<8x32xf32> -> vector<8x32xf32>
    %c0_36 = arith.constant 0 : index
    %c0_37 = arith.constant 0 : index
    %41 = vector.load %arg12[%c0_36, %c0_37] : memref<1x32xf32, #tpu.memory_space<vmem>>, vector<1x32xf32>
    %42 = vector.broadcast %41 : vector<1x32xf32> to vector<8x32xf32>
    %43 = arith.addf %40, %42 : vector<8x32xf32>
    %cst_38 = arith.constant 0.000000e+00 : f32
    %44 = vector.broadcast %cst_38 : f32 to vector<8x32xf32>
    %45 = arith.maximumf %43, %44 : vector<8x32xf32>
    %c96 = arith.constant 96 : index
    %c0_39 = arith.constant 0 : index
    %46 = vector.load %arg13[%c96, %c0_39] : memref<128x32xbf16, #tpu.memory_space<vmem>>, vector<32x32xbf16>
    %47 = arith.truncf %45 : vector<8x32xf32> to vector<8x32xbf16>
    %cst_40 = arith.constant dense<0.000000e+00> : vector<8x32xf32>
    %48 = tpu.matmul %47, %46, %cst_40 {dimension_numbers = #tpu.dot_dimension_numbers<[1], [0], [0], [1], [0, 0, 1, 1], [], []>} : vector<8x32xbf16>, vector<32x32xbf16>, vector<8x32xf32> -> vector<8x32xf32>
    %49 = arith.addf %37, %48 : vector<8x32xf32>
    %50 = math.absf %49 : vector<8x32xf32>
    %cst_41 = arith.constant dense<0.000000e+00> : vector<8xf32>
    %51 = vector.multi_reduction <add>, %50, %cst_41 [1] : vector<8x32xf32> to vector<8xf32>
    %52 = vector.shape_cast %51 : vector<8xf32> to vector<8x1xf32>
    %c0_42 = arith.constant 0 : index
    %c0_43 = arith.constant 0 : index
    %53 = vector.load %arg15[%c0_42, %c0_43] : memref<8x1xf32, #tpu.memory_space<vmem>>, vector<8x1xf32>
    tpu.vector_store %arg15[%c0_42, %c0_43], %52 {strides = array<i32>} : memref<8x1xf32, #tpu.memory_space<vmem>>, vector<8x1xf32>,
    return
  }
  func.func @transform_0(%arg0: i32) -> (i32, i32) {
    %c0_i32 = arith.constant 0 : i32
    %c0_i32_0 = arith.constant 0 : i32
    return %arg0, %c0_i32 : i32, i32
  }
  func.func @transform_1(%arg0: i32) -> (i32, i32) {
    %c0_i32 = arith.constant 0 : i32
    %c0_i32_0 = arith.constant 0 : i32
    return %arg0, %c0_i32 : i32, i32
  }
  func.func @transform_2(%arg0: i32) -> (i32, i32) {
    %c0_i32 = arith.constant 0 : i32
    %c0_i32_0 = arith.constant 0 : i32
    return %arg0, %c0_i32 : i32, i32
  }
  func.func @transform_3(%arg0: i32) -> (i32, i32) {
    %c0_i32 = arith.constant 0 : i32
    %c0_i32_0 = arith.constant 0 : i32
    return %arg0, %c0_i32 : i32, i32
  }
  func.func @transform_4(%arg0: i32) -> (i32, i32) {
    %c0_i32 = arith.constant 0 : i32
    %c0_i32_0 = arith.constant 0 : i32
    %c0_i32_1 = arith.constant 0 : i32
    return %c0_i32, %c0_i32_0 : i32, i32
  }
  func.func @transform_5(%arg0: i32) -> (i32, i32) {
    %c0_i32 = arith.constant 0 : i32
    %c0_i32_0 = arith.constant 0 : i32
    %c0_i32_1 = arith.constant 0 : i32
    return %c0_i32, %c0_i32_0 : i32, i32
  }
  func.func @transform_6(%arg0: i32) -> (i32, i32) {
    %c0_i32 = arith.constant 0 : i32
    %c0_i32_0 = arith.constant 0 : i32
    %c0_i32_1 = arith.constant 0 : i32
    return %c0_i32, %c0_i32_0 : i32, i32
  }
  func.func @transform_7(%arg0: i32) -> (i32, i32) {
    %c0_i32 = arith.constant 0 : i32
    %c0_i32_0 = arith.constant 0 : i32
    %c0_i32_1 = arith.constant 0 : i32
    return %c0_i32, %c0_i32_0 : i32, i32
  }
  func.func @transform_8(%arg0: i32) -> (i32, i32) {
    %c0_i32 = arith.constant 0 : i32
    %c0_i32_0 = arith.constant 0 : i32
    %c0_i32_1 = arith.constant 0 : i32
    return %c0_i32, %c0_i32_0 : i32, i32
  }
  func.func @transform_9(%arg0: i32) -> (i32, i32) {
    %c0_i32 = arith.constant 0 : i32
    %c0_i32_0 = arith.constant 0 : i32
    %c0_i32_1 = arith.constant 0 : i32
    return %c0_i32, %c0_i32_0 : i32, i32
  }
  func.func @transform_10(%arg0: i32) -> (i32, i32) {
    %c0_i32 = arith.constant 0 : i32
    %c0_i32_0 = arith.constant 0 : i32
    %c0_i32_1 = arith.constant 0 : i32
    return %c0_i32, %c0_i32_0 : i32, i32
  }
  func.func @transform_11(%arg0: i32) -> (i32, i32) {
    %c0_i32 = arith.constant 0 : i32
    %c0_i32_0 = arith.constant 0 : i32
    %c0_i32_1 = arith.constant 0 : i32
    return %c0_i32, %c0_i32_0 : i32, i32
  }
  func.func @transform_12(%arg0: i32) -> (i32, i32) {
    %c0_i32 = arith.constant 0 : i32
    %c0_i32_0 = arith.constant 0 : i32
    %c0_i32_1 = arith.constant 0 : i32
    return %c0_i32, %c0_i32_0 : i32, i32
  }
  func.func @transform_13(%arg0: i32) -> (i32, i32) {
    %c0_i32 = arith.constant 0 : i32
    %c0_i32_0 = arith.constant 0 : i32
    %c0_i32_1 = arith.constant 0 : i32
    return %c0_i32, %c0_i32_0 : i32, i32
  }
  func.func @transform_14(%arg0: i32) -> (i32, i32) {
    %c0_i32 = arith.constant 0 : i32
    %c0_i32_0 = arith.constant 0 : i32
    return %arg0, %c0_i32 : i32, i32
  }
}

</mosaic_0001>

<bundles_post_ra>
// kernel: tpu_custom_call.1
= control target key start
LH: loop header
LB: loop body
LE: loop exit
PB: predicated region body
PF: predicated region fallthrough
CT: control target
= control target key end

     0   :  { %v732_v0 = vmov 0.0   ;;  %vm733_vm0 = vmmov 0   ;;  %vm73_vm1 = vcmask 261120   ;;  %vm209_vm2 = vcmask 1043456   ;;  %s927_s4 = inlined_call_operand.vmem [shape: bf16[32,32], index: 4, kind: input, shape index: {}]   ;;  %s928_s5 = inlined_call_operand.vmem [shape: bf16[24,32], index: 5, kind: input, shape index: {}]   ;;  %s929_s0 = inlined_call_operand.vmem [shape: bf16[8,32], index: 0, kind: input, shape index: {}]   ;;  %s930_s6 = inlined_call_operand.vmem [shape: bf16[16,32], index: 6, kind: input, shape index: {}]   ;;  %s931_s7 = inlined_call_operand.vmem [shape: bf16[40,32], index: 7, kind: input, shape index: {}]   ;;  %s932_s12 = inlined_call_operand.vmem [shape: bf16[128,32], index: 12, kind: input, shape index: {}]   ;;  %s933_s1 = inlined_call_operand.vmem [shape: bf16[8,24], index: 1, kind: input, shape index: {}]   ;;  %s934_s2 = inlined_call_operand.vmem [shape: bf16[8,16], index: 2, kind: input, shape index: {}]   ;;  %s935_s3 = inlined_call_operand.vmem [shape: bf16[8,40], index: 3, kind: input, shape index: {}]   ;;  %s936_s8 = inlined_call_operand.vmem [shape: f32[1,32], index: 8, kind: input, shape index: {}]   ;;  %s937_s9 = inlined_call_operand.vmem [shape: f32[1,32], index: 9, kind: input, shape index: {}]   ;;  %s938_s10 = inlined_call_operand.vmem [shape: f32[1,32], index: 10, kind: input, shape index: {}]   ;;  %s939_s11 = inlined_call_operand.vmem [shape: f32[1,32], index: 11, kind: input, shape index: {}]   ;;  %s940_s13 = inlined_call_operand.vmem [shape: f32[1,32], index: 13, kind: input, shape index: {}]   ;;  %s941_s14 = inlined_call_operand.vmem [shape: f32[8,1], index: 14, kind: output, shape index: {}]  }
   0x1   :  { %637 = vmatprep.subr.bf16.mxu0 %v732_v0  ;;  %v716_v1 = vld [vmem:[%s927_s4] sm:$0xff]   ;;  %641 = vmatprep.mubr.msk.bf16.mxu0 %vm733_vm0, %v732_v0  ;;  %v717_v2 = vld [vmem:[%s927_s4 + $0x8] sm:$0xff]   ;;  %vm205_vm3 = vcmask 195584   ;;  %vm331_vm4 = vcmask 130048   ;;  %v723_v13 = vld [vmem:[%s931_s7 + $0x10] ss:$0 sps:$4 sm:$0xff]  }
   0x2   :  { %645 = vmatprep.subr.bf16.mxu1 %v732_v0  ;;  %649 = vmatprep.mubr.msk.bf16.mxu1 %vm733_vm0, %v732_v0  ;;  %v49_v3 = vld [vmem:[%s929_s0] sm:$0xf]  ;;  %v719_v5 = vld [vmem:[%s928_s5 + $0x8] ss:$0 sps:$4 sm:$0xff]   ;;  %v470_v14 = vsel %vm209_vm2, %v723_v13, 0  ;;  %vm465_vm5 = vcmask 326656  }
   0x3   :  { %638 = vmatpush3.bf16.msra.mxu0 %v716_v1  ;;  %v718_v4 = vld [vmem:[%s928_s5] sm:$0xff]   ;;  %v211_v7 = vsel %vm209_vm2, %v719_v5, 0  ;;  %v722_v12 = vld [vmem:[%s931_s7 + $0x8] sm:$0xff]   ;;  %v726_v24 = vld [vmem:[%s932_s12 + $0x10] sm:$0xff]   ;;  %vm578_vm6 = vcmask 7168  }
   0x4   :  { %639 = vmatprep.subr.bf16.mxu0 %v732_v0  ;;  %v724_v6 = vld [vmem:[%s932_s12] sm:$0xff]   ;;  %v725_v16 = vld [vmem:[%s932_s12 + $0x8] sm:$0xff]   ;;  %v727_v28 = vld [vmem:[%s932_s12 + $0x18] sm:$0xff]  }
   0x5   :  { %646 = vmatpush3.bf16.msra.mxu1 %v724_v6  ;;  %v185_v8 = vld [vmem:[%s933_s1] sm:$0xf]  ;;  %v729_v42 = vld [vmem:[%s932_s12 + $0x28] sm:$0xff]   ;;  %v730_v45 = vld [vmem:[%s932_s12 + $0x30] sm:$0xff]  }
   0x6   :  { %v720_v9 = vld [vmem:[%s930_s6] sm:$0xff]   ;;  %647 = vmatprep.subr.bf16.mxu1 %v732_v0  ;;  %v731_v52 = vld [vmem:[%s932_s12 + $0x38] sm:$0xff]  }
   0x7   :  { %640 = vmatpush3.bf16.msra.mxu0 %v717_v2  ;;  %v315_v10 = vld [vmem:[%s934_s2] sm:$0xf] }
   0x8   :  { %653 = vmatprep.subr.bf16.mxu0 %v732_v0  ;;  %v721_v11 = vld [vmem:[%s931_s7] sm:$0xff]  }
   0x9   :  { %v437_v15 = vld [vmem:[%s935_s3] sm:$0xf]  ;;  %648 = vmatpush3.bf16.msra.mxu1 %v725_v16 }
   0xa   :  { %642 = vmatmul.mubr.msk.bf16.vlgmr.msra.gmra.mrb[0].mxu0 %vm73_vm1, %v49_v3  ;;  %661 = vmatprep.subr.bf16.mxu1 %v732_v0  ;;  %v584_v17 = vld [vmem:[%s936_s8] ss:$0 sm:$0xff] }
   0xb   :  { %654 = vmatpush3.bf16.msra.mxu0 %v718_v4  ;;  %657 = vmatprep.mubr.msk.bf16.mxu0 %vm733_vm0, %v732_v0  ;;  %v592_v26 = vld [vmem:[%s937_s9] ss:$0 sm:$0xff] }
   0xc   :  { %655 = vmatprep.subr.bf16.mxu0 %v732_v0  ;;  %v728_v35 = vld [vmem:[%s932_s12 + $0x20] sm:$0xff]  }
   0xd   :  { %v599_v36 = vld [vmem:[%s938_s10] ss:$0 sm:$0xff] }
   0xe   :  { %v605_v46 = vld [vmem:[%s939_s11] ss:$0 sm:$0xff] }
   0xf   :  { %656 = vmatpush3.bf16.msra.mxu0 %v211_v7  ;;  %v591_v55 = vld [vmem:[%s940_s13] ss:$0 sm:$0xff] }
  0x10   :  { %669 = vmatprep.subr.bf16.mxu0 %v732_v0 }
  0x12   :  { %658 = vmatmul.mubr.msk.bf16.vlgmr.msra.gmra.mrb[4].mxu0 %vm205_vm3, %v185_v8 }
  0x13   :  { %670 = vmatpush3.bf16.msra.mxu0 %v720_v9  ;;  %671 = vmatprep.mubr.msk.bf16.mxu0 %vm733_vm0, %v732_v0 }
  0x14   :  { %683 = vmatprep.subr.bf16.mxu0 %v732_v0 }
  0x1a   :  { %672 = vmatmul.mubr.msk.bf16.vlgmr.msra.gmra.mrb[8].mxu0 %vm331_vm4, %v315_v10 }
  0x1b   :  { %684 = vmatpush3.bf16.msra.mxu0 %v721_v11  ;;  %689 = vmatprep.mubr.msk.bf16.mxu0 %vm733_vm0, %v732_v0 }
  0x1c   :  { %685 = vmatprep.subr.bf16.mxu0 %v732_v0 }
  0x1f   :  { %686 = vmatpush3.bf16.msra.mxu0 %v722_v12 }
  0x20   :  { %687 = vmatprep.subr.bf16.mxu0 %v732_v0 }
  0x23   :  { %688 = vmatpush3.bf16.msra.mxu0 %v470_v14 }
  0x26   :  { %690 = vmatmul.mubr.msk.bf16.vlgmr.msra.gmra.mrb[12].mxu0 %vm465_vm5, %v437_v15 }
  0xdd   :  { %v111_v18 = vpop.f32.mrb[0].mxu0 }
  0xde   :  { %v112_v19 = vadd.f32 %v584_v17, %v111_v18  ;;  %v643_v20 = vpop.f32.mrb[1].mxu0 }
  0xdf   :  { %v114_v21 = vpop.f32.mrb[2].mxu0 }
  0xe0   :  { %v117_v22 = vmax.f32 %v112_v19, 0.0  ;;  %v644_v23 = vpop.f32.mrb[3].mxu0 }
  0xe2   :  { %v122_v25 = vpack.c.bf16 %v117_v22, %v117_v22 }
  0xe4   :  { %650 = vmatmul.mubr.msk.bf16.vlgmr.msra.gmra.mrb[0].mxu1 %vm73_vm1, %v122_v25 }
  0xe5   :  { %662 = vmatpush3.bf16.msra.mxu1 %v726_v24  ;;  %v247_v27 = vpop.f32.mrb[4].mxu0  ;;  %665 = vmatprep.mubr.msk.bf16.mxu1 %vm733_vm0, %v732_v0 }
  0xe6   :  { %v248_v29 = vadd.f32 %v592_v26, %v247_v27  ;;  %v659_v30 = vpop.f32.mrb[5].mxu0  ;;  %663 = vmatprep.subr.bf16.mxu1 %v732_v0 }
  0xe7   :  { %v250_v31 = vpop.f32.mrb[6].mxu0 }
  0xe8   :  { %v253_v32 = vmax.f32 %v248_v29, 0.0  ;;  %v660_v33 = vpop.f32.mrb[7].mxu0 }
  0xe9   :  { %664 = vmatpush3.bf16.msra.mxu1 %v727_v28 }
  0xea   :  { %675 = vmatprep.subr.bf16.mxu1 %v732_v0  ;;  %v258_v34 = vpack.c.bf16 %v253_v32, %v253_v32 }
  0xed   :  { %v369_v37 = vpop.f32.mrb[8].mxu0 }
  0xee   :  { %v673_v38 = vpop.f32.mrb[9].mxu0  ;;  %v370_v40 = vadd.f32 %v599_v36, %v369_v37 }
  0xef   :  { %v372_v39 = vpop.f32.mrb[10].mxu0 }
  0xf0   :  { %666 = vmatmul.mubr.msk.bf16.vlgmr.msra.gmra.mrb[0].mxu1 %vm73_vm1, %v258_v34  ;;  %v674_v41 = vpop.f32.mrb[11].mxu0  ;;  %v375_v43 = vmax.f32 %v370_v40, 0.0 }
  0xf1   :  { %676 = vmatpush3.bf16.msra.mxu1 %v728_v35  ;;  %679 = vmatprep.mubr.msk.bf16.mxu1 %vm733_vm0, %v732_v0 }
  0xf2   :  { %677 = vmatprep.subr.bf16.mxu1 %v732_v0  ;;  %v380_v44 = vpack.c.bf16 %v375_v43, %v375_v43 }
  0xf5   :  { %678 = vmatpush3.bf16.msra.mxu1 %v729_v42 }
  0xf6   :  { %693 = vmatprep.subr.bf16.mxu1 %v732_v0 }
  0xf9   :  { %v506_v47 = vpop.f32.mrb[12].mxu0 }
  0xfa   :  { %v691_v48 = vpop.f32.mrb[13].mxu0  ;;  %v507_v50 = vadd.f32 %v605_v46, %v506_v47 }
  0xfb   :  { %v509_v49 = vpop.f32.mrb[14].mxu0 }
  0xfc   :  { %680 = vmatmul.mubr.msk.bf16.vlgmr.msra.gmra.mrb[0].mxu1 %vm73_vm1, %v380_v44  ;;  %v692_v51 = vpop.f32.mrb[15].mxu0  ;;  %v512_v53 = vmax.f32 %v507_v50, 0.0 }
  0xfd   :  { %694 = vmatpush3.bf16.msra.mxu1 %v730_v45  ;;  %697 = vmatprep.mubr.msk.bf16.mxu1 %vm733_vm0, %v732_v0 }
  0xfe   :  { %695 = vmatprep.subr.bf16.mxu1 %v732_v0  ;;  %v517_v54 = vpack.c.bf16 %v512_v53, %v512_v53 }
 0x101   :  { %696 = vmatpush3.bf16.msra.mxu1 %v731_v52 }
 0x108   :  { %698 = vmatmul.mubr.msk.bf16.vlgmr.msra.gmra.mrb[0].mxu1 %vm73_vm1, %v517_v54 }
 0x1db   :  { %v567_v56 = vpop.f32.mrb[0].mxu1 }
 0x1dc   :  { %v701_v57 = vadd.f32 %v591_v55, %v567_v56  ;;  %v699_v58 = vpop.f32.mrb[1].mxu1 }
 0x1dd   :  { %v570_v59 = vpop.f32.mrb[2].mxu1 }
 0x1de   :  { %v574_v60 = vand.u32 2147483647, %v701_v57  ;;  %v700_v61 = vpop.f32.mrb[3].mxu1 }
 0x1e0   :  { %v575_v62 = vsel %vm73_vm1, %v574_v60, 0.0 }
 0x1e1   :  { %576 = vadd.xlane.f32.xlu0 %v575_v62 }
 0x26e   :  { %v577_v63 = vpop.xlane.xlu0 %576 }
 0x26f   :  { %579 = vst.msk [vmem:[%s941_s14] sm:$0xff] %vm578_vm6, %v577_v63 }

</bundles_post_ra>
